<compile_context>
chip_gen: v7x
topology: tpu7x:2x2x1
jax: 0.10.0
libtpu: 0.0.40
codegen_flags: <defaults>
</compile_context>

<pallas_src>
import jax
import jax.numpy as jnp
from jax.experimental import pallas as pl
from jax.experimental.pallas import tpu as pltpu

_DEFAULT_TILE_BYTES = 8 * 1024 * 1024     # per-block bytes (per operand)
_DEFAULT_VMEM_LIMIT = 48 * 1024 * 1024    # scoped VMEM limit handed to Mosaic
_SPLIT_THRESHOLD_BYTES = 4 * 1024 * 1024  # force an even 2-step grid above this


def _round_up(a, b):
    return -(-a // b) * b


def _sigmoid_kernel(x_ref, o_ref):
    # Elementwise sigmoid on the whole VMEM tile; exp lands in the EUP slot.
    o_ref[...] = jax.nn.sigmoid(x_ref[...]).astype(o_ref.dtype)


def _select_tiling():
    """Return (tile_bytes, vmem_limit_bytes), clamped to this chip's VMEM."""
    tile_bytes = _DEFAULT_TILE_BYTES
    vmem_limit = _DEFAULT_VMEM_LIMIT
    try:
        info = pltpu.get_tpu_info()
        vmem_cap = int(getattr(info, "vmem_capacity_bytes", 0)) or (64 << 20)
        # Keep the scoped limit well under physical VMEM, and the live working
        # set (2 double-buffered operands = 4 * tile) well under the limit.
        vmem_limit = min(_DEFAULT_VMEM_LIMIT, (vmem_cap * 3) // 4)
        tile_bytes = min(_DEFAULT_TILE_BYTES, max(1 << 20, vmem_limit // 6))
    except Exception:
        pass
    return tile_bytes, vmem_limit


def tudui_forward(x: jax.Array, *, donate: bool = False) -> jax.Array:
    """Sigmoid over an arbitrary-shaped tensor, computed in a Pallas TPU kernel."""
    if x.size == 0:
        return x

    orig_shape = x.shape
    dtype = x.dtype
    total = int(x.size)
    itemsize = jnp.dtype(dtype).itemsize
    # Native sublane packing: 8 rows (f32), 16 (bf16/f16), 32 (int8/fp8).
    sublane = max(8, 32 // itemsize)

    tile_bytes, vmem_limit = _select_tiling()
    cost = pl.CostEstimate(
        flops=3 * total,
        transcendentals=total,
        bytes_accessed=2 * total * itemsize,
    )
    alias = {0: 0} if donate else {}
    flat = x.reshape(-1)

    # ---- Lane width: widest multiple of 128 that exactly divides the element
    # count, so the slab is (rows, width) with zero padding and zero slicing.
    width = next((w for w in (1024, 512, 256, 128) if total % w == 0), None)

    if width is None:
        # Rare case (element count not a multiple of 128): run the whole
        # tensor as one full-array block (exempt from the (8,128) rule).
        # TODO(synk): very large non-128-divisible inputs would need a masked
        # tiled path instead of a single resident VMEM block.
        out2d = pl.pallas_call(
            _sigmoid_kernel,
            out_shape=jax.ShapeDtypeStruct((1, total), dtype),
            compiler_params=pltpu.CompilerParams(vmem_limit_bytes=vmem_limit),
            cost_estimate=cost,
            input_output_aliases=alias,
        )(flat.reshape(1, total))
        return out2d.reshape(orig_shape)

    rows = total // width

    # ---- Row-tile selection -------------------------------------------------
    target_rows = max(sublane, (tile_bytes // (width * itemsize)) // sublane * sublane)
    if rows <= target_rows:
        # Single block covering the full first dim (exempt from 8-divisibility).
        tile_rows = rows
        # Medium inputs: split into an even 2-step parallel grid so both v7x
        # TensorCores (and both DMA engines) get equal halves of the work.
        if total * itemsize >= _SPLIT_THRESHOLD_BYTES and rows >= 2 * sublane:
            tile_rows = _round_up(-(-rows // 2), sublane)
    else:
        tile_rows = target_rows

    # Ragged last block (rows % tile_rows != 0) is masked by Pallas itself:
    # only the kernel touches HBM, traffic stays at the 2*N*itemsize roofline.
    grid = (pl.cdiv(rows, tile_rows),)

    out2d = pl.pallas_call(
        _sigmoid_kernel,
        out_shape=jax.ShapeDtypeStruct((rows, width), dtype),
        grid_spec=pltpu.PrefetchScalarGridSpec(
            num_scalar_prefetch=0,
            grid=grid,
            in_specs=[pl.BlockSpec((tile_rows, width), lambda i: (i, 0))],
            out_specs=pl.BlockSpec((tile_rows, width), lambda i: (i, 0)),
        ),
        compiler_params=pltpu.CompilerParams(
            dimension_semantics=("parallel",),
            vmem_limit_bytes=vmem_limit,
        ),
        cost_estimate=cost,
        input_output_aliases=alias,
    )(flat.reshape(rows, width))

    return out2d.reshape(orig_shape)


if __name__ == "__main__":
    key = jax.random.PRNGKey(0)
    # Small NCHW input consistent with the module (sigmoid is elementwise):
    # batch=2, channels=4, spatial=16x16.
    x = jax.random.normal(key, (2, 4, 16, 16), dtype=jnp.float32)

    out = jax.block_until_ready(tudui_forward(x))

    # Correctness check against plain JAX reference.
    ref = jax.nn.sigmoid(x)
    assert out.shape == x.shape
    assert out.dtype == x.dtype
    assert jnp.allclose(out, ref, atol=1e-6), "mismatch vs reference sigmoid"

    print("KERNEL_OK")
</pallas_src>

<mosaic_0001>
module attributes {stable_mosaic.version = 11 : i64} {
  func.func @_sigmoid_kernel(%arg0: i32, %arg1: memref<2x1024xf32, #tpu.memory_space<vmem>>, %arg2: memref<2x1024xf32, #tpu.memory_space<vmem>>) attributes {dimension_semantics = [#tpu.dimension_semantics<parallel>], iteration_bounds = array<i64: 1>, scalar_prefetch = 0 : i64, scratch_operands = 0 : i64, tpu.core_type = #tpu.core_type<tc>, window_params = [{transform_indices = @transform_0, window_bounds = array<i64: 2, 1024>}, {transform_indices = @transform_1, window_bounds = array<i64: 2, 1024>}]} {
    %c0 = arith.constant 0 : index
    %c0_0 = arith.constant 0 : index
    %0 = vector.load %arg1[%c0, %c0_0] : memref<2x1024xf32, #tpu.memory_space<vmem>>, vector<2x1024xf32>
    %1 = arith.negf %0 : vector<2x1024xf32>
    %2 = math.exp %1 : vector<2x1024xf32>
    %cst = arith.constant 1.000000e+00 : f32
    %3 = vector.broadcast %cst : f32 to vector<2x1024xf32>
    %4 = arith.addf %3, %2 : vector<2x1024xf32>
    %5 = arith.divf %3, %4 : vector<2x1024xf32>
    %c0_1 = arith.constant 0 : index
    %c0_2 = arith.constant 0 : index
    %6 = vector.load %arg2[%c0_1, %c0_2] : memref<2x1024xf32, #tpu.memory_space<vmem>>, vector<2x1024xf32>
    tpu.vector_store %arg2[%c0_1, %c0_2], %5 {strides = array<i32>} : memref<2x1024xf32, #tpu.memory_space<vmem>>, vector<2x1024xf32>,
    return
  }
  func.func @transform_0(%arg0: i32) -> (i32, i32) {
    %c0_i32 = arith.constant 0 : i32
    %c0_i32_0 = arith.constant 0 : i32
    return %arg0, %c0_i32 : i32, i32
  }
  func.func @transform_1(%arg0: i32) -> (i32, i32) {
    %c0_i32 = arith.constant 0 : i32
    %c0_i32_0 = arith.constant 0 : i32
    return %arg0, %c0_i32 : i32, i32
  }
}

</mosaic_0001>

<bundles_post_ra>
// kernel: tpu_custom_call.1
= control target key start
LH: loop header
LB: loop body
LE: loop exit
PB: predicated region body
PF: predicated region fallthrough
CT: control target
= control target key end

     0   :  { %6 = vsyncpa [#allocation3], 0  ;;  %s148_s0 = inlined_call_operand.hbm [shape: f32[2,1024], index: 0, kind: input, shape index: {}]   ;;  %s149_s1 = inlined_call_operand.hbm [shape: f32[2,1024], index: 1, kind: output, shape index: {}]  }
   0x1   :  { %7 = vsyncpa [#allocation4], 0  ;;  %s112_s6 = smov [#allocation2]   ;;  %s64_s10 = scalar_lea.hbm %s148_s0, 256 }
   0x2   :  { %s14_s7 = sshll.u32 %s112_s6, 4  ;;  %p65_p0 = scmp.ne.s32.totalorder %s148_s0, %s64_s10  ;;  %s15_s7 = int_to_ptr.vmem [resolvable:$true] %s14_s7 }
   0x3   :  { %p68_p1 = scmp.lt.u32.totalorder %s64_s10, %s148_s0 }
   0x5   :  { %p70_p2 = pnand %p68_p1, %p65_p0 }
   0x7   :  { %73 = shalt.err (!%p70_p2)
}
   0x8   :  { %s74_s15 = scalar_lea.vmem %s15_s7, 256  ;;  %p79_p4 = scmp.lt.s32.totalorder %s15_s7, %s15_s7 }
   0x9   :  { %p75_p3 = scmp.ne.s32.totalorder %s15_s7, %s74_s15  ;;  %p80_p5 = scmp.lt.s32.totalorder %s74_s15, %s74_s15 }
   0xb   :  { %p81_p6 = por %p80_p5, %p79_p4 }
   0xd   :  { %p82_p7 = pnand %p81_p6, %p75_p3 }
   0xf   :  { %85 = shalt.err (!%p82_p7)
}
  0x10   :  { %17 = dma.hbm_to_vmem [thread:$0]  %s148_s0, 256, %s15_s7, [#allocation3]  }
  0x11   :  { %108 = dma.done.wait [#allocation3], 256  }
  0x12   :  { %109 = vsyncadd [#allocation3], 4294967040  ;;  %v21_v0 = vld [vmem:[#allocation2] sm:$0xff]  ;;  %v22_v1 = vld [vmem:[#allocation2 + $0x8] sm:$0xff]  ;;  %s113_s18 = smov [#allocation5]  }
  0x13   :  { %v52_v2 = vmul.f32 -1.442695, %v21_v0  ;;  %v53_v3 = vmul.f32 -1.442695, %v22_v1  ;;  %s43_s19 = sshll.u32 %s113_s18, 4  ;;  %s44_s19 = int_to_ptr.vmem [resolvable:$true] %s43_s19 }
  0x14   :  { %s86_s0 = scalar_lea.vmem %s44_s19, 256  ;;  %p91_p9 = scmp.lt.s32.totalorder %s44_s19, %s44_s19 }
  0x15   :  { %56 = vpow2.f32 %v52_v2  ;;  %p87_p8 = scmp.ne.s32.totalorder %s44_s19, %s86_s0  ;;  %p92_p10 = scmp.lt.s32.totalorder %s86_s0, %s86_s0 }
  0x16   :  { %58 = vpow2.f32 %v53_v3 }
  0x17   :  { %p93_p11 = por %p92_p10, %p91_p9 }
  0x19   :  { %p94_p12 = pnand %p93_p11, %p87_p8 }
  0x1f   :  { %v57_v4 = vpop.eup %56 }
  0x20   :  { %v59_v5 = vpop.eup %58  ;;  %v29_v6 = vadd.f32 1.0, %v57_v4 }
  0x21   :  { %v30_v7 = vadd.f32 1.0, %v59_v5 }
  0x22   :  { %60 = vrcp.f32 %v29_v6 }
  0x23   :  { %62 = vrcp.f32 %v30_v7 }
  0x2c   :  { %v61_v8 = vpop.eup %60 }
  0x2d   :  { %v63_v9 = vpop.eup %62  ;;  %35 = vst [vmem:[#allocation5] sm:$0xff] %v61_v8 }
  0x2e   :  { %36 = vst [vmem:[#allocation5 + $0x8] sm:$0xff] %v63_v9 }
  0x2f   :  { %97 = shalt.err (!%p94_p12)
}
  0x30   :  { %s98_s22 = scalar_lea.hbm %s149_s1, 256 }
  0x31   :  { %p99_p13 = scmp.ne.s32.totalorder %s149_s1, %s98_s22  ;;  %p102_p0 = scmp.lt.u32.totalorder %s98_s22, %s149_s1 }
  0x33   :  { %p104_p1 = pnand %p102_p0, %p99_p13 }
  0x35   :  { %107 = shalt.err (!%p104_p1)
}
  0x36   :  { %46 = dma.vmem_to_hbm [thread:$0]  %s44_s19, 256, %s149_s1, [#allocation4]  }
  0x37   :  { %110 = dma.done.wait [#allocation4], 256  }
  0x38   :  { %111 = vsyncadd [#allocation4], 4294967040 }
  0x39   :  { %50 = vsyncpa [#allocation3], 1 }
  0x3a   :  { %51 = vsyncpa [#allocation4], 1 }

</bundles_post_ra>
